<compile_context>
chip_gen: v7x
topology: tpu7x:2x2x1
jax: 0.10.0
libtpu: 0.0.40
codegen_flags: <defaults>
</compile_context>

<pallas_src>
import jax
import jax.numpy as jnp
from jax.experimental import pallas as pl
from jax.experimental.pallas import tpu as pltpu

IN_F = 130
HID = 150
OUT_F = 1
BN_EPS = 1e-5

LANE = 128
SUBLANE = 8


def _round_up(n, m):
    return ((n + m - 1) // m) * m


IN_PAD = _round_up(IN_F, LANE)    # 256
HID_PAD = _round_up(HID, LANE)    # 256


# ---------------------------------------------------------------------------
# Kernel
# ---------------------------------------------------------------------------
def _sigmoid(z):
    # One EUP push per element (tanh) instead of exp + reciprocal/divide.
    # Mathematically identical to 1/(1+exp(-z)).
    return 0.5 * jnp.tanh(0.5 * z) + 0.5


def nullnet_kernel(x_ref,
                   w1_ref, b1_ref,
                   w2_ref, b2_ref,
                   w3_ref, b3_ref,
                   w4_ref, b4_ref,
                   w5_ref, b5_ref,
                   o_ref):
    """One batch tile: (TB, IN_PAD) bf16 -> (TB, OUT_F) f32."""

    def matmul_bias(h_bf16, w_ref, b_ref):
        # bf16 operands on the MXU, f32 accumulation, f32 bias add.
        return jnp.dot(h_bf16, w_ref[...],
                       preferred_element_type=jnp.float32) + b_ref[...]

    def silu_bf16(z_f32):
        # SiLU in f32, then one cast so the intermediate lives in VMEM as bf16
        # (halves activation spill/reload traffic and scratch).
        return (z_f32 * _sigmoid(z_f32)).astype(jnp.bfloat16)

    h = x_ref[...]                                 # (TB, IN_PAD) bf16
    h = silu_bf16(matmul_bias(h, w1_ref, b1_ref))  # fc1  (normalize folded)
    h = silu_bf16(matmul_bias(h, w2_ref, b2_ref))  # fc2  (batchnorm2 folded)
    h = silu_bf16(matmul_bias(h, w3_ref, b3_ref))  # fc3  (batchnorm3 folded)
    h = silu_bf16(matmul_bias(h, w4_ref, b4_ref))  # fc4  (batchnorm4 folded)

    # fc5: OUT_F == 1, so an N=1 MXU pass would produce 1/256 useful output.
    # Do it as a VPU broadcast multiply + lane reduction (XLU) + bias instead.
    logits = jnp.sum(h.astype(jnp.float32) * w5_ref[...],
                     axis=-1, keepdims=True) + b5_ref[...]      # (TB, 1) f32

    # TODO(synk): if a trace shows the narrow (TB,1) masked store on the tail,
    # switch to a lane-dense (1, TB) out block and reshape on the host.
    o_ref[...] = _sigmoid(logits)


def nullnet_forward(x, kernel_params, *, tb=2048):
    """x: (N, IN_F) float32; kernel_params: output of prepare_kernel_params."""
    n = x.shape[0]
    assert x.shape[1] == IN_F

    # Batch tiling: sublane-multiple tiles. For batches below 2*tb, split into
    # (at least) two grid steps so v7x's two TensorCores both get work on the
    # "parallel" batch axis; neutral on v5e/v6e (single TC).
    n_sub = _round_up(n, SUBLANE)
    if n_sub >= 2 * tb:
        tb_eff = tb
    else:
        tb_eff = max(SUBLANE, _round_up((n_sub + 1) // 2, SUBLANE))
    n_pad = _round_up(n_sub, tb_eff)

    # Host-side pad AND cast: the MXU consumes bf16 operands anyway, so store
    # the padded input as bf16 -> halves input HBM->VMEM bytes per tile.
    x_p = jnp.zeros((n_pad, IN_PAD), jnp.bfloat16).at[:n, :IN_F].set(
        x.astype(jnp.bfloat16))

    def resident(a):
        # Whole-array block, constant block index -> stays VMEM-resident
        # across grid steps.
        # TODO(synk): pipeline_mode=pl.Buffered(1) would reclaim the redundant
        # second buffer (~0.65 MiB); only matters for headroom on v7x.
        return pl.BlockSpec(a.shape, lambda i: (0,) * a.ndim)

    in_specs = [pl.BlockSpec((tb_eff, IN_PAD), lambda i: (i, 0))]
    in_specs += [resident(p) for p in kernel_params]

    out = pl.pallas_call(
        nullnet_kernel,
        out_shape=jax.ShapeDtypeStruct((n_pad, OUT_F), jnp.float32),
        grid=(n_pad // tb_eff,),
        in_specs=in_specs,
        out_specs=pl.BlockSpec((tb_eff, OUT_F), lambda i: (i, 0)),
        compiler_params=pltpu.CompilerParams(
            dimension_semantics=("parallel",),
            # ~0.65 MiB resident params (x2 buffers) + bf16 input double-buffer
            # + activation scratch fit comfortably; 32 MiB is within every
            # generation's physical VMEM (and raises v5e's 16 MiB default).
            vmem_limit_bytes=32 * 1024 * 1024),
    )(x_p, *kernel_params)
    return out[:n]


# ---------------------------------------------------------------------------
# Deterministic parameter construction + BN folding + padding
# ---------------------------------------------------------------------------
def _bn_params(key, features):
    k1, k2, k3, k4 = jax.random.split(key, 4)
    gamma = 1.0 + 0.1 * jax.random.normal(k1, (features,), jnp.float32)
    beta = 0.1 * jax.random.normal(k2, (features,), jnp.float32)
    running_mean = 0.1 * jax.random.normal(k3, (features,), jnp.float32)
    running_var = jax.random.uniform(k4, (features,), jnp.float32, 0.5, 1.5)
    return gamma, beta, running_mean, running_var


def _linear_params(key, fan_in, fan_out):
    kw, kb = jax.random.split(key)
    bound = 1.0 / jnp.sqrt(fan_in)
    w = jax.random.uniform(kw, (fan_in, fan_out), jnp.float32, -bound, bound)
    b = jax.random.uniform(kb, (fan_out,), jnp.float32, -bound, bound)
    return w, b


def init_raw_params(key):
    keys = jax.random.split(key, 10)
    return dict(
        bn0=_bn_params(keys[0], IN_F),           # normalize
        fc1=_linear_params(keys[1], IN_F, HID),
        bn2=_bn_params(keys[2], HID),
        fc2=_linear_params(keys[3], HID, HID),
        bn3=_bn_params(keys[4], HID),
        fc3=_linear_params(keys[5], HID, HID),
        bn4=_bn_params(keys[6], HID),
        fc4=_linear_params(keys[7], HID, HID),
        bn5=_bn_params(keys[8], HID),
        fc5=_linear_params(keys[9], HID, OUT_F),
    )


def _bn_affine(bn):
    gamma, beta, mean, var = bn
    scale = gamma * jax.lax.rsqrt(var + BN_EPS)
    shift = beta - mean * scale
    return scale, shift


def _fold_bn_into_linear(bn, linear):
    """Eval mode: Linear(BN(x)) == x @ W' + b'."""
    scale, shift = _bn_affine(bn)
    w, b = linear                                # w: (in, out), b: (out,)
    w_f = w * scale[:, None]
    b_f = b + shift @ w
    return w_f, b_f


def _pad2(a, rows, cols):
    out = jnp.zeros((rows, cols), a.dtype)
    return out.at[:a.shape[0], :a.shape[1]].set(a)


def prepare_kernel_params(raw):
    """Fold BN into Linear, zero-pad to lane multiples, cast to kernel dtypes.

    fc1..fc4 -> (in_pad, HID_PAD) bf16 weights + (1, HID_PAD) f32 biases.
    fc5      -> (1, HID_PAD) f32 weight row (used by the VPU dot) + (1,1) f32.
    """
    folded = [
        _fold_bn_into_linear(raw["bn0"], raw["fc1"]),   # 130 -> 150
        _fold_bn_into_linear(raw["bn2"], raw["fc2"]),   # 150 -> 150
        _fold_bn_into_linear(raw["bn3"], raw["fc3"]),
        _fold_bn_into_linear(raw["bn4"], raw["fc4"]),
    ]
    in_dims = [IN_PAD, HID_PAD, HID_PAD, HID_PAD]
    flat = []
    for (w, b), kd in zip(folded, in_dims):
        flat.append(_pad2(w, kd, HID_PAD).astype(jnp.bfloat16))   # bf16 weights
        flat.append(_pad2(b.reshape(1, -1), 1, HID_PAD))          # f32 biases
    w5, b5 = _fold_bn_into_linear(raw["bn5"], raw["fc5"])          # (150,1),(1,)
    flat.append(_pad2(w5.T, 1, HID_PAD))                           # (1,256) f32
    flat.append(b5.reshape(1, 1).astype(jnp.float32))              # (1,1)  f32
    return tuple(flat)


# ---------------------------------------------------------------------------
# References
# ---------------------------------------------------------------------------
def reference_forward_f32(x, raw):
    """PyTorch-equivalent eval-mode forward, all f32, unfolded / unpadded."""
    def bn(h, p):
        scale, shift = _bn_affine(p)
        return h * scale + shift
    silu = lambda z: z * jax.nn.sigmoid(z)
    h = bn(x, raw["bn0"])
    h = silu(h @ raw["fc1"][0] + raw["fc1"][1]); h = bn(h, raw["bn2"])
    h = silu(h @ raw["fc2"][0] + raw["fc2"][1]); h = bn(h, raw["bn3"])
    h = silu(h @ raw["fc3"][0] + raw["fc3"][1]); h = bn(h, raw["bn4"])
    h = silu(h @ raw["fc4"][0] + raw["fc4"][1]); h = bn(h, raw["bn5"])
    return jax.nn.sigmoid(h @ raw["fc5"][0] + raw["fc5"][1])


def reference_forward_kernel_math(x, kernel_params):
    """Same folded / padded / bf16 / tanh-sigmoid math as the kernel, plain JAX."""
    w1, b1, w2, b2, w3, b3, w4, b4, w5row, b5 = kernel_params
    sig = lambda z: 0.5 * jnp.tanh(0.5 * z) + 0.5

    h = jnp.zeros((x.shape[0], IN_PAD), jnp.bfloat16).at[:, :IN_F].set(
        x.astype(jnp.bfloat16))
    for w, b in ((w1, b1), (w2, b2), (w3, b3), (w4, b4)):
        z = jnp.dot(h, w, preferred_element_type=jnp.float32) + b
        h = (z * sig(z)).astype(jnp.bfloat16)
    logits = jnp.sum(h.astype(jnp.float32) * w5row, axis=-1, keepdims=True) + b5
    return sig(logits)


if __name__ == "__main__":
    key = jax.random.PRNGKey(0)
    kx, kx2, kp = jax.random.split(key, 3)

    raw = init_raw_params(kp)
    kparams = prepare_kernel_params(raw)

    # --- small primary check (single grid step) -----------------------------
    batch = 8
    x = jax.random.normal(kx, (batch, IN_F), jnp.float32)
    out = jax.block_until_ready(nullnet_forward(x, kparams))
    assert out.shape == (batch, OUT_F), out.shape

    ref_k = reference_forward_kernel_math(x, kparams)
    err_k = float(jnp.max(jnp.abs(out - ref_k)))
    assert err_k < 5e-3, f"kernel-math ref max abs err {err_k}"

    ref_f32 = reference_forward_f32(x, raw)
    err_f = float(jnp.max(jnp.abs(out - ref_f32)))
    assert err_f < 3e-2, f"f32 ref max abs err {err_f}"

    # --- second check: non-tile-multiple batch -> padding + 2-step grid -----
    batch2 = 200
    x2 = jax.random.normal(kx2, (batch2, IN_F), jnp.float32)
    out2 = jax.block_until_ready(nullnet_forward(x2, kparams))
    assert out2.shape == (batch2, OUT_F), out2.shape
    ref_k2 = reference_forward_kernel_math(x2, kparams)
    err_k2 = float(jnp.max(jnp.abs(out2 - ref_k2)))
    assert err_k2 < 5e-3, f"kernel-math ref (batch=200) max abs err {err_k2}"

    print("KERNEL_OK")
</pallas_src>

<mosaic_0001>
module attributes {stable_mosaic.version = 11 : i64} {
  func.func @nullnet_kernel(%arg0: i32, %arg1: memref<8x256xbf16, #tpu.memory_space<vmem>>, %arg2: memref<256x256xbf16, #tpu.memory_space<vmem>>, %arg3: memref<1x256xf32, #tpu.memory_space<vmem>>, %arg4: memref<256x256xbf16, #tpu.memory_space<vmem>>, %arg5: memref<1x256xf32, #tpu.memory_space<vmem>>, %arg6: memref<256x256xbf16, #tpu.memory_space<vmem>>, %arg7: memref<1x256xf32, #tpu.memory_space<vmem>>, %arg8: memref<256x256xbf16, #tpu.memory_space<vmem>>, %arg9: memref<1x256xf32, #tpu.memory_space<vmem>>, %arg10: memref<1x256xf32, #tpu.memory_space<vmem>>, %arg11: memref<1x1xf32, #tpu.memory_space<vmem>>, %arg12: memref<8x1xf32, #tpu.memory_space<vmem>>) attributes {dimension_semantics = [#tpu.dimension_semantics<parallel>], iteration_bounds = array<i64: 1>, scalar_prefetch = 0 : i64, scratch_operands = 0 : i64, tpu.core_type = #tpu.core_type<tc>, window_params = [{transform_indices = @transform_0, window_bounds = array<i64: 8, 256>}, {pipeline_mode = #tpu.pipeline_mode<synchronous>, transform_indices = @transform_1, window_bounds = array<i64: 256, 256>}, {pipeline_mode = #tpu.pipeline_mode<synchronous>, transform_indices = @transform_2, window_bounds = array<i64: 1, 256>}, {pipeline_mode = #tpu.pipeline_mode<synchronous>, transform_indices = @transform_3, window_bounds = array<i64: 256, 256>}, {pipeline_mode = #tpu.pipeline_mode<synchronous>, transform_indices = @transform_4, window_bounds = array<i64: 1, 256>}, {pipeline_mode = #tpu.pipeline_mode<synchronous>, transform_indices = @transform_5, window_bounds = array<i64: 256, 256>}, {pipeline_mode = #tpu.pipeline_mode<synchronous>, transform_indices = @transform_6, window_bounds = array<i64: 1, 256>}, {pipeline_mode = #tpu.pipeline_mode<synchronous>, transform_indices = @transform_7, window_bounds = array<i64: 256, 256>}, {pipeline_mode = #tpu.pipeline_mode<synchronous>, transform_indices = @transform_8, window_bounds = array<i64: 1, 256>}, {pipeline_mode = #tpu.pipeline_mode<synchronous>, transform_indices = @transform_9, window_bounds = array<i64: 1, 256>}, {pipeline_mode = #tpu.pipeline_mode<synchronous>, transform_indices = @transform_10, window_bounds = array<i64: 1, 1>}, {transform_indices = @transform_11, window_bounds = array<i64: 8, 1>}]} {
    %c0 = arith.constant 0 : index
    %c0_0 = arith.constant 0 : index
    %0 = vector.load %arg1[%c0, %c0_0] : memref<8x256xbf16, #tpu.memory_space<vmem>>, vector<8x256xbf16>
    %c0_1 = arith.constant 0 : index
    %c0_2 = arith.constant 0 : index
    %1 = vector.load %arg2[%c0_1, %c0_2] : memref<256x256xbf16, #tpu.memory_space<vmem>>, vector<256x256xbf16>
    %cst = arith.constant dense<0.000000e+00> : vector<8x256xf32>
    %2 = tpu.matmul %0, %1, %cst {dimension_numbers = #tpu.dot_dimension_numbers<[1], [0], [0], [1], [0, 0, 1, 1], [], []>} : vector<8x256xbf16>, vector<256x256xbf16>, vector<8x256xf32> -> vector<8x256xf32>
    %c0_3 = arith.constant 0 : index
    %c0_4 = arith.constant 0 : index
    %3 = vector.load %arg3[%c0_3, %c0_4] : memref<1x256xf32, #tpu.memory_space<vmem>>, vector<1x256xf32>
    %4 = vector.broadcast %3 : vector<1x256xf32> to vector<8x256xf32>
    %5 = arith.addf %2, %4 : vector<8x256xf32>
    %cst_5 = arith.constant 5.000000e-01 : f32
    %6 = vector.broadcast %cst_5 : f32 to vector<8x256xf32>
    %7 = arith.mulf %6, %5 : vector<8x256xf32>
    %8 = math.tanh %7 : vector<8x256xf32>
    %cst_6 = arith.constant 5.000000e-01 : f32
    %9 = vector.broadcast %cst_6 : f32 to vector<8x256xf32>
    %10 = arith.mulf %9, %8 : vector<8x256xf32>
    %cst_7 = arith.constant 5.000000e-01 : f32
    %11 = vector.broadcast %cst_7 : f32 to vector<8x256xf32>
    %12 = arith.addf %10, %11 : vector<8x256xf32>
    %13 = arith.mulf %5, %12 : vector<8x256xf32>
    %14 = arith.truncf %13 : vector<8x256xf32> to vector<8x256xbf16>
    %c0_8 = arith.constant 0 : index
    %c0_9 = arith.constant 0 : index
    %15 = vector.load %arg4[%c0_8, %c0_9] : memref<256x256xbf16, #tpu.memory_space<vmem>>, vector<256x256xbf16>
    %cst_10 = arith.constant dense<0.000000e+00> : vector<8x256xf32>
    %16 = tpu.matmul %14, %15, %cst_10 {dimension_numbers = #tpu.dot_dimension_numbers<[1], [0], [0], [1], [0, 0, 1, 1], [], []>} : vector<8x256xbf16>, vector<256x256xbf16>, vector<8x256xf32> -> vector<8x256xf32>
    %c0_11 = arith.constant 0 : index
    %c0_12 = arith.constant 0 : index
    %17 = vector.load %arg5[%c0_11, %c0_12] : memref<1x256xf32, #tpu.memory_space<vmem>>, vector<1x256xf32>
    %18 = vector.broadcast %17 : vector<1x256xf32> to vector<8x256xf32>
    %19 = arith.addf %16, %18 : vector<8x256xf32>
    %cst_13 = arith.constant 5.000000e-01 : f32
    %20 = vector.broadcast %cst_13 : f32 to vector<8x256xf32>
    %21 = arith.mulf %20, %19 : vector<8x256xf32>
    %22 = math.tanh %21 : vector<8x256xf32>
    %cst_14 = arith.constant 5.000000e-01 : f32
    %23 = vector.broadcast %cst_14 : f32 to vector<8x256xf32>
    %24 = arith.mulf %23, %22 : vector<8x256xf32>
    %cst_15 = arith.constant 5.000000e-01 : f32
    %25 = vector.broadcast %cst_15 : f32 to vector<8x256xf32>
    %26 = arith.addf %24, %25 : vector<8x256xf32>
    %27 = arith.mulf %19, %26 : vector<8x256xf32>
    %28 = arith.truncf %27 : vector<8x256xf32> to vector<8x256xbf16>
    %c0_16 = arith.constant 0 : index
    %c0_17 = arith.constant 0 : index
    %29 = vector.load %arg6[%c0_16, %c0_17] : memref<256x256xbf16, #tpu.memory_space<vmem>>, vector<256x256xbf16>
    %cst_18 = arith.constant dense<0.000000e+00> : vector<8x256xf32>
    %30 = tpu.matmul %28, %29, %cst_18 {dimension_numbers = #tpu.dot_dimension_numbers<[1], [0], [0], [1], [0, 0, 1, 1], [], []>} : vector<8x256xbf16>, vector<256x256xbf16>, vector<8x256xf32> -> vector<8x256xf32>
    %c0_19 = arith.constant 0 : index
    %c0_20 = arith.constant 0 : index
    %31 = vector.load %arg7[%c0_19, %c0_20] : memref<1x256xf32, #tpu.memory_space<vmem>>, vector<1x256xf32>
    %32 = vector.broadcast %31 : vector<1x256xf32> to vector<8x256xf32>
    %33 = arith.addf %30, %32 : vector<8x256xf32>
    %cst_21 = arith.constant 5.000000e-01 : f32
    %34 = vector.broadcast %cst_21 : f32 to vector<8x256xf32>
    %35 = arith.mulf %34, %33 : vector<8x256xf32>
    %36 = math.tanh %35 : vector<8x256xf32>
    %cst_22 = arith.constant 5.000000e-01 : f32
    %37 = vector.broadcast %cst_22 : f32 to vector<8x256xf32>
    %38 = arith.mulf %37, %36 : vector<8x256xf32>
    %cst_23 = arith.constant 5.000000e-01 : f32
    %39 = vector.broadcast %cst_23 : f32 to vector<8x256xf32>
    %40 = arith.addf %38, %39 : vector<8x256xf32>
    %41 = arith.mulf %33, %40 : vector<8x256xf32>
    %42 = arith.truncf %41 : vector<8x256xf32> to vector<8x256xbf16>
    %c0_24 = arith.constant 0 : index
    %c0_25 = arith.constant 0 : index
    %43 = vector.load %arg8[%c0_24, %c0_25] : memref<256x256xbf16, #tpu.memory_space<vmem>>, vector<256x256xbf16>
    %cst_26 = arith.constant dense<0.000000e+00> : vector<8x256xf32>
    %44 = tpu.matmul %42, %43, %cst_26 {dimension_numbers = #tpu.dot_dimension_numbers<[1], [0], [0], [1], [0, 0, 1, 1], [], []>} : vector<8x256xbf16>, vector<256x256xbf16>, vector<8x256xf32> -> vector<8x256xf32>
    %c0_27 = arith.constant 0 : index
    %c0_28 = arith.constant 0 : index
    %45 = vector.load %arg9[%c0_27, %c0_28] : memref<1x256xf32, #tpu.memory_space<vmem>>, vector<1x256xf32>
    %46 = vector.broadcast %45 : vector<1x256xf32> to vector<8x256xf32>
    %47 = arith.addf %44, %46 : vector<8x256xf32>
    %cst_29 = arith.constant 5.000000e-01 : f32
    %48 = vector.broadcast %cst_29 : f32 to vector<8x256xf32>
    %49 = arith.mulf %48, %47 : vector<8x256xf32>
    %50 = math.tanh %49 : vector<8x256xf32>
    %cst_30 = arith.constant 5.000000e-01 : f32
    %51 = vector.broadcast %cst_30 : f32 to vector<8x256xf32>
    %52 = arith.mulf %51, %50 : vector<8x256xf32>
    %cst_31 = arith.constant 5.000000e-01 : f32
    %53 = vector.broadcast %cst_31 : f32 to vector<8x256xf32>
    %54 = arith.addf %52, %53 : vector<8x256xf32>
    %55 = arith.mulf %47, %54 : vector<8x256xf32>
    %56 = arith.truncf %55 : vector<8x256xf32> to vector<8x256xbf16>
    %57 = arith.extf %56 : vector<8x256xbf16> to vector<8x256xf32>
    %c0_32 = arith.constant 0 : index
    %c0_33 = arith.constant 0 : index
    %58 = vector.load %arg10[%c0_32, %c0_33] : memref<1x256xf32, #tpu.memory_space<vmem>>, vector<1x256xf32>
    %59 = vector.broadcast %58 : vector<1x256xf32> to vector<8x256xf32>
    %60 = arith.mulf %57, %59 : vector<8x256xf32>
    %cst_34 = arith.constant dense<0.000000e+00> : vector<8xf32>
    %61 = vector.multi_reduction <add>, %60, %cst_34 [1] : vector<8x256xf32> to vector<8xf32>
    %62 = vector.shape_cast %61 : vector<8xf32> to vector<8x1xf32>
    %c0_35 = arith.constant 0 : index
    %c0_36 = arith.constant 0 : index
    %63 = vector.load %arg11[%c0_35, %c0_36] : memref<1x1xf32, #tpu.memory_space<vmem>>, vector<1x1xf32>
    %64 = vector.broadcast %63 : vector<1x1xf32> to vector<8x1xf32>
    %65 = arith.addf %62, %64 : vector<8x1xf32>
    %cst_37 = arith.constant 5.000000e-01 : f32
    %66 = vector.broadcast %cst_37 : f32 to vector<8x1xf32>
    %67 = arith.mulf %66, %65 : vector<8x1xf32>
    %68 = math.tanh %67 : vector<8x1xf32>
    %cst_38 = arith.constant 5.000000e-01 : f32
    %69 = vector.broadcast %cst_38 : f32 to vector<8x1xf32>
    %70 = arith.mulf %69, %68 : vector<8x1xf32>
    %cst_39 = arith.constant 5.000000e-01 : f32
    %71 = vector.broadcast %cst_39 : f32 to vector<8x1xf32>
    %72 = arith.addf %70, %71 : vector<8x1xf32>
    %c0_40 = arith.constant 0 : index
    %c0_41 = arith.constant 0 : index
    %73 = vector.load %arg12[%c0_40, %c0_41] : memref<8x1xf32, #tpu.memory_space<vmem>>, vector<8x1xf32>
    tpu.vector_store %arg12[%c0_40, %c0_41], %72 {strides = array<i32>} : memref<8x1xf32, #tpu.memory_space<vmem>>, vector<8x1xf32>,
    return
  }
  func.func @transform_0(%arg0: i32) -> (i32, i32) {
    %c0_i32 = arith.constant 0 : i32
    %c0_i32_0 = arith.constant 0 : i32
    return %arg0, %c0_i32 : i32, i32
  }
  func.func @transform_1(%arg0: i32) -> (i32, i32) {
    %c0_i32 = arith.constant 0 : i32
    %c0_i32_0 = arith.constant 0 : i32
    %c0_i32_1 = arith.constant 0 : i32
    return %c0_i32, %c0_i32_0 : i32, i32
  }
  func.func @transform_2(%arg0: i32) -> (i32, i32) {
    %c0_i32 = arith.constant 0 : i32
    %c0_i32_0 = arith.constant 0 : i32
    %c0_i32_1 = arith.constant 0 : i32
    return %c0_i32, %c0_i32_0 : i32, i32
  }
  func.func @transform_3(%arg0: i32) -> (i32, i32) {
    %c0_i32 = arith.constant 0 : i32
    %c0_i32_0 = arith.constant 0 : i32
    %c0_i32_1 = arith.constant 0 : i32
    return %c0_i32, %c0_i32_0 : i32, i32
  }
  func.func @transform_4(%arg0: i32) -> (i32, i32) {
    %c0_i32 = arith.constant 0 : i32
    %c0_i32_0 = arith.constant 0 : i32
    %c0_i32_1 = arith.constant 0 : i32
    return %c0_i32, %c0_i32_0 : i32, i32
  }
  func.func @transform_5(%arg0: i32) -> (i32, i32) {
    %c0_i32 = arith.constant 0 : i32
    %c0_i32_0 = arith.constant 0 : i32
    %c0_i32_1 = arith.constant 0 : i32
    return %c0_i32, %c0_i32_0 : i32, i32
  }
  func.func @transform_6(%arg0: i32) -> (i32, i32) {
    %c0_i32 = arith.constant 0 : i32
    %c0_i32_0 = arith.constant 0 : i32
    %c0_i32_1 = arith.constant 0 : i32
    return %c0_i32, %c0_i32_0 : i32, i32
  }
  func.func @transform_7(%arg0: i32) -> (i32, i32) {
    %c0_i32 = arith.constant 0 : i32
    %c0_i32_0 = arith.constant 0 : i32
    %c0_i32_1 = arith.constant 0 : i32
    return %c0_i32, %c0_i32_0 : i32, i32
  }
  func.func @transform_8(%arg0: i32) -> (i32, i32) {
    %c0_i32 = arith.constant 0 : i32
    %c0_i32_0 = arith.constant 0 : i32
    %c0_i32_1 = arith.constant 0 : i32
    return %c0_i32, %c0_i32_0 : i32, i32
  }
  func.func @transform_9(%arg0: i32) -> (i32, i32) {
    %c0_i32 = arith.constant 0 : i32
    %c0_i32_0 = arith.constant 0 : i32
    %c0_i32_1 = arith.constant 0 : i32
    return %c0_i32, %c0_i32_0 : i32, i32
  }
  func.func @transform_10(%arg0: i32) -> (i32, i32) {
    %c0_i32 = arith.constant 0 : i32
    %c0_i32_0 = arith.constant 0 : i32
    %c0_i32_1 = arith.constant 0 : i32
    return %c0_i32, %c0_i32_0 : i32, i32
  }
  func.func @transform_11(%arg0: i32) -> (i32, i32) {
    %c0_i32 = arith.constant 0 : i32
    %c0_i32_0 = arith.constant 0 : i32
    return %arg0, %c0_i32 : i32, i32
  }
}

</mosaic_0001>

<bundles_post_ra>
// kernel: tpu_custom_call.1
= control target key start
LH: loop header
LB: loop body
LE: loop exit
PB: predicated region body
PF: predicated region fallthrough
CT: control target
= control target key end

     0   :  { %s1828_s0 = inlined_call_operand.hbm [shape: bf16[8,256], index: 0, kind: input, shape index: {}]   ;;  %s1829_s1 = inlined_call_operand.hbm [shape: bf16[256,256], index: 1, kind: input, shape index: {}]   ;;  %s1830_s2 = inlined_call_operand.vmem [shape: f32[1,256], index: 2, kind: input, shape index: {}]   ;;  %s1831_s3 = inlined_call_operand.hbm [shape: bf16[256,256], index: 3, kind: input, shape index: {}]   ;;  %s1832_s4 = inlined_call_operand.vmem [shape: f32[1,256], index: 4, kind: input, shape index: {}]   ;;  %s1833_s5 = inlined_call_operand.hbm [shape: bf16[256,256], index: 5, kind: input, shape index: {}]   ;;  %s1834_s6 = inlined_call_operand.vmem [shape: f32[1,256], index: 6, kind: input, shape index: {}]   ;;  %s1835_s7 = inlined_call_operand.hbm [shape: bf16[256,256], index: 7, kind: input, shape index: {}]   ;;  %s1836_s8 = inlined_call_operand.vmem [shape: f32[1,256], index: 8, kind: input, shape index: {}]   ;;  %s1837_s9 = inlined_call_operand.vmem [shape: f32[1,256], index: 9, kind: input, shape index: {}]   ;;  %s1838_s10 = inlined_call_operand.<no memory space> [shape: f32[1,1], index: 10, kind: input, shape index: {}]   ;;  %s1839_s11 = inlined_call_operand.vmem [shape: f32[8,1], index: 11, kind: output, shape index: {}]  }
   0x1   :  { %v16_v0 = vstv %s1838_s10 }
   0x2   :  { %17 = vst [vmem:[#allocation2] sm:$0x1] %v16_v0 }
   0x3   :  { %18 = vsyncpa [#allocation4], 0 }
   0x4   :  { %19 = vsyncpa [#allocation6], 0 }
   0x5   :  { %20 = vsyncpa [#allocation9], 0  ;;  %s1648_s19 = smov [#allocation5]   ;;  %s1532_s23 = scalar_lea.hbm %s1829_s1, 4096 }
   0x6   :  { %s36_s20 = sshll.u32 %s1648_s19, 4  ;;  %p1533_p0 = scmp.ne.s32.totalorder %s1829_s1, %s1532_s23  ;;  %s37_s20 = int_to_ptr.vmem [resolvable:$true] %s36_s20 }
   0x7   :  { %p1536_p1 = scmp.lt.u32.totalorder %s1532_s23, %s1829_s1 }
   0x9   :  { %p1538_p2 = pnand %p1536_p1, %p1533_p0 }
   0xb   :  { %1541 = shalt.err (!%p1538_p2)
}
   0xc   :  { %s1542_s10 = scalar_lea.vmem %s37_s20, 4096  ;;  %p1547_p4 = scmp.lt.s32.totalorder %s37_s20, %s37_s20 }
   0xd   :  { %p1543_p3 = scmp.ne.s32.totalorder %s37_s20, %s1542_s10  ;;  %p1548_p5 = scmp.lt.s32.totalorder %s1542_s10, %s1542_s10 }
   0xf   :  { %p1549_p6 = por %p1548_p5, %p1547_p4 }
  0x11   :  { %p1550_p7 = pnand %p1549_p6, %p1543_p3 }
  0x13   :  { %1553 = shalt.err (!%p1550_p7)
}
  0x14   :  { %s1649_s28 = smov 128   ;;  %s1650_s29 = smov 8  }
  0x15   :  { %42 = dma.hbm_to_vmem [thread:$0]  %s1829_s1, 4096, %s37_s20, [#allocation6], %s1649_s28, %s1649_s28, %s1650_s29  }
  0x16   :  { %s1651_s13 = smov [#allocation8]   ;;  %s1652_s15 = smov [#allocation3]  }
  0x17   :  { %s64_s14 = sshll.u32 %s1651_s13, 4  ;;  %s27_s16 = sshll.u32 %s1652_s15, 4  ;;  %s65_s14 = int_to_ptr.vmem [resolvable:$true] %s64_s14  ;;  %s28_s16 = int_to_ptr.vmem [resolvable:$true] %s27_s16 }
  0x18   :  { %s1554_s19 = scalar_lea.hbm %s1833_s5, 4096 }
  0x19   :  { %p1555_p8 = scmp.ne.s32.totalorder %s1833_s5, %s1554_s19  ;;  %p1558_p9 = scmp.lt.u32.totalorder %s1554_s19, %s1833_s5 }
  0x1b   :  { %p1560_p10 = pnand %p1558_p9, %p1555_p8 }
  0x1d   :  { %1563 = shalt.err (!%p1560_p10)
}
  0x1e   :  { %s1564_s1 = scalar_lea.vmem %s65_s14, 4096  ;;  %p1569_p12 = scmp.lt.s32.totalorder %s65_s14, %s65_s14 }
  0x1f   :  { %p1565_p11 = scmp.ne.s32.totalorder %s65_s14, %s1564_s1  ;;  %p1570_p13 = scmp.lt.s32.totalorder %s1564_s1, %s1564_s1 }
  0x21   :  { %p1571_p0 = por %p1570_p13, %p1569_p12 }
  0x23   :  { %p1572_p1 = pnand %p1571_p0, %p1565_p11 }
  0x25   :  { %1575 = shalt.err (!%p1572_p1)
}
  0x26   :  { %70 = dma.hbm_to_vmem [thread:$0]  %s1833_s5, 4096, %s65_s14, [#allocation9], %s1649_s28, %s1649_s28, %s1650_s29  }
  0x27   :  { %s1576_s10 = scalar_lea.hbm %s1828_s0, 128 }
  0x28   :  { %p1577_p2 = scmp.ne.s32.totalorder %s1828_s0, %s1576_s10  ;;  %p1580_p3 = scmp.lt.u32.totalorder %s1576_s10, %s1828_s0 }
  0x2a   :  { %p1582_p4 = pnand %p1580_p3, %p1577_p2 }
  0x2c   :  { %1585 = shalt.err (!%p1582_p4)
}
  0x2d   :  { %s1586_s17 = scalar_lea.vmem %s28_s16, 128  ;;  %p1591_p6 = scmp.lt.s32.totalorder %s28_s16, %s28_s16 }
  0x2e   :  { %p1587_p5 = scmp.ne.s32.totalorder %s28_s16, %s1586_s17  ;;  %p1592_p7 = scmp.lt.s32.totalorder %s1586_s17, %s1586_s17 }
  0x30   :  { %p1593_p8 = por %p1592_p7, %p1591_p6 }
  0x32   :  { %p1594_p9 = pnand %p1593_p8, %p1587_p5 }
  0x34   :  { %1597 = shalt.err (!%p1594_p9)
}
  0x35   :  { %30 = dma.hbm_to_vmem [thread:$0]  %s1828_s0, 128, %s28_s16, [#allocation4]  }
  0x36   :  { %s1653_s18 = smov [#allocation7]   ;;  %s1654_s21 = smov [#allocation10]  }
  0x37   :  { %s50_s19 = sshll.u32 %s1653_s18, 4  ;;  %s78_s22 = sshll.u32 %s1654_s21, 4  ;;  %s51_s19 = int_to_ptr.vmem [resolvable:$true] %s50_s19  ;;  %s79_s22 = int_to_ptr.vmem [resolvable:$true] %s78_s22 }
  0x38   :  { %s1598_s1 = scalar_lea.hbm %s1831_s3, 4096 }
  0x39   :  { %p1599_p10 = scmp.ne.s32.totalorder %s1831_s3, %s1598_s1  ;;  %p1602_p11 = scmp.lt.u32.totalorder %s1598_s1, %s1831_s3 }
  0x3b   :  { %p1604_p12 = pnand %p1602_p11, %p1599_p10 }
  0x3d   :  { %1607 = shalt.err (!%p1604_p12)
}
  0x3e   :  { %s1608_s0 = scalar_lea.vmem %s51_s19, 4096  ;;  %p1613_p0 = scmp.lt.s32.totalorder %s51_s19, %s51_s19 }
  0x3f   :  { %p1609_p13 = scmp.ne.s32.totalorder %s51_s19, %s1608_s0  ;;  %p1614_p1 = scmp.lt.s32.totalorder %s1608_s0, %s1608_s0 }
  0x41   :  { %p1615_p2 = por %p1614_p1, %p1613_p0 }
  0x43   :  { %p1616_p3 = pnand %p1615_p2, %p1609_p13 }
  0x45   :  { %1619 = shalt.err (!%p1616_p3)
}
  0x46   :  { %56 = dma.hbm_to_vmem [thread:$0]  %s1831_s3, 4096, %s51_s19, [#allocation6], %s1649_s28, %s1649_s28, %s1650_s29  }
  0x47   :  { %s1620_s13 = scalar_lea.hbm %s1835_s7, 4096 }
  0x48   :  { %p1621_p4 = scmp.ne.s32.totalorder %s1835_s7, %s1620_s13  ;;  %p1624_p5 = scmp.lt.u32.totalorder %s1620_s13, %s1835_s7 }
  0x4a   :  { %p1626_p6 = pnand %p1624_p5, %p1621_p4 }
  0x4c   :  { %1629 = shalt.err (!%p1626_p6)
}
  0x4d   :  { %s1630_s18 = scalar_lea.vmem %s79_s22, 4096  ;;  %p1635_p8 = scmp.lt.s32.totalorder %s79_s22, %s79_s22 }
  0x4e   :  { %p1631_p7 = scmp.ne.s32.totalorder %s79_s22, %s1630_s18  ;;  %p1636_p9 = scmp.lt.s32.totalorder %s1630_s18, %s1630_s18 }
  0x50   :  { %p1637_p10 = por %p1636_p9, %p1635_p8 }
  0x52   :  { %p1638_p11 = pnand %p1637_p10, %p1631_p7 }
  0x54   :  { %1641 = shalt.err (!%p1638_p11)
}
  0x55   :  { %84 = dma.hbm_to_vmem [thread:$0]  %s1835_s7, 4096, %s79_s22, [#allocation9], %s1649_s28, %s1649_s28, %s1650_s29  }
  0x56   :  { %1642 = dma.done.wait [#allocation4], 128  }
  0x57   :  { %1643 = vsyncadd [#allocation4], 4294967168 }
  0x58   :  { %1644 = dma.done.wait [#allocation6], 8192  }
  0x59   :  { %1645 = vsyncadd [#allocation6], 4294959104 }
  0x5a   :  { %1646 = dma.done.wait [#allocation9], 8192  }
  0x5b   :  { %1647 = vsyncadd [#allocation9], 4294959104  ;;  %v1320_v1 = vld [vmem:[#allocation5 + $0x4] ss:$8 sps:$4 sm:$0xff]   ;;  %v1322_v2 = vld [vmem:[#allocation5] ss:$8 sps:$4 sm:$0xff]  }
  0x5c   :  { %318 = vmatprep.subr.bf16.mxu0 %v1320_v1  ;;  %v1323_v3 = vld [vmem:[#allocation5 + $0x14] ss:$8 sps:$4 sm:$0xff]   ;;  %v1325_v4 = vld [vmem:[#allocation5 + $0x10] ss:$8 sps:$4 sm:$0xff]   ;;  %v1326_v5 = vld [vmem:[#allocation5 + $0x24] ss:$8 sps:$4 sm:$0xff]  }
  0x5d   :  { %319 = vmatpush1.bf16.msra.mxu0 %v1322_v2  ;;  %v1328_v6 = vld [vmem:[#allocation5 + $0x20] ss:$8 sps:$4 sm:$0xff]   ;;  %v1329_v7 = vld [vmem:[#allocation5 + $0x34] ss:$8 sps:$4 sm:$0xff]   ;;  %v1331_v8 = vld [vmem:[#allocation5 + $0x30] ss:$8 sps:$4 sm:$0xff]  }
  0x5e   :  { %320 = vmatprep.subr.bf16.mxu0 %v1323_v3  ;;  %v1332_v9 = vld [vmem:[#allocation5 + $0x44] ss:$8 sps:$4 sm:$0xff]   ;;  %v1334_v10 = vld [vmem:[#allocation5 + $0x40] ss:$8 sps:$4 sm:$0xff]   ;;  %v1335_v11 = vld [vmem:[#allocation5 + $0x54] ss:$8 sps:$4 sm:$0xff]  }
  0x5f   :  { %v1337_v12 = vld [vmem:[#allocation5 + $0x50] ss:$8 sps:$4 sm:$0xff]   ;;  %v1338_v13 = vld [vmem:[#allocation5 + $0x64] ss:$8 sps:$4 sm:$0xff]   ;;  %v1340_v14 = vld [vmem:[#allocation5 + $0x60] ss:$8 sps:$4 sm:$0xff]  }
  0x60   :  { %v1790_v15 = vld [vmem:[#allocation3] sm:$0xff]  ;;  %v1370_v17 = vld [vmem:[#allocation7 + $0x4] ss:$8 sps:$4 sm:$0xff]   ;;  %v1372_v18 = vld [vmem:[#allocation7] ss:$8 sps:$4 sm:$0xff]   ;;  %vm1173_vm0 = vcmask 7168  }
  0x61   :  { %321 = vmatpush1.bf16.msra.mxu0 %v1325_v4  ;;  %v1183_v16 = vcombine.high %v1790_v15, %v1790_v15  ;;  %v1373_v19 = vld [vmem:[#allocation7 + $0x14] ss:$8 sps:$4 sm:$0xff]   ;;  %575 = vmatprep.subr.bf16.mxu1 %v1370_v17  ;;  %v1343_v21 = vld [vmem:[#allocation5 + $0x70] ss:$8 sps:$4 sm:$0xff]   ;;  %v1376_v23 = vld [vmem:[#allocation7 + $0x24] ss:$8 sps:$4 sm:$0xff]   ;;  %v1182_v55 = vcombine.low %v1790_v15, %v1790_v15 }
  0x62   :  { %322 = vmatprep.subr.bf16.mxu0 %v1326_v5  ;;  %v1341_v20 = vld [vmem:[#allocation5 + $0x74] ss:$8 sps:$4 sm:$0xff]   ;;  %576 = vmatpush1.bf16.msra.mxu1 %v1372_v18  ;;  %v1375_v22 = vld [vmem:[#allocation7 + $0x10] ss:$8 sps:$4 sm:$0xff]   ;;  %v1344_v24 = vld [vmem:[#allocation5 + $0x84] ss:$8 sps:$4 sm:$0xff]  }
  0x63   :  { %350 = vmatprep.mubr.bf16.mxu0 %v1183_v16  ;;  %577 = vmatprep.subr.bf16.mxu1 %v1373_v19  ;;  %v1346_v25 = vld [vmem:[#allocation5 + $0x80] ss:$8 sps:$4 sm:$0xff]   ;;  %v1379_v27 = vld [vmem:[#allocation7 + $0x34] ss:$8 sps:$4 sm:$0xff]   ;;  %v1349_v29 = vld [vmem:[#allocation5 + $0x90] ss:$8 sps:$4 sm:$0xff]  }
  0x64   :  { %v1378_v26 = vld [vmem:[#allocation7 + $0x20] ss:$8 sps:$4 sm:$0xff]   ;;  %v1347_v28 = vld [vmem:[#allocation5 + $0x94] ss:$8 sps:$4 sm:$0xff]   ;;  %v1350_v30 = vld [vmem:[#allocation5 + $0xa4] ss:$8 sps:$4 sm:$0xff]  }
  0x65   :  { %323 = vmatpush1.bf16.msra.mxu0 %v1328_v6  ;;  %v1381_v31 = vld [vmem:[#allocation7 + $0x30] ss:$8 sps:$4 sm:$0xff]   ;;  %v1382_v32 = vld [vmem:[#allocation7 + $0x44] ss:$8 sps:$4 sm:$0xff]   ;;  %v1384_v33 = vld [vmem:[#allocation7 + $0x40] ss:$8 sps:$4 sm:$0xff]  }
  0x66   :  { %324 = vmatprep.subr.bf16.mxu0 %v1329_v7  ;;  %578 = vmatpush1.bf16.msra.mxu1 %v1375_v22  ;;  %v1352_v34 = vld [vmem:[#allocation5 + $0xa0] ss:$8 sps:$4 sm:$0xff]   ;;  %v1385_v35 = vld [vmem:[#allocation7 + $0x54] ss:$8 sps:$4 sm:$0xff]   ;;  %v1387_v37 = vld [vmem:[#allocation7 + $0x50] ss:$8 sps:$4 sm:$0xff]  }
  0x67   :  { %579 = vmatprep.subr.bf16.mxu1 %v1376_v23  ;;  %v1353_v36 = vld [vmem:[#allocation5 + $0xb4] ss:$8 sps:$4 sm:$0xff]   ;;  %v1355_v38 = vld [vmem:[#allocation5 + $0xb0] ss:$8 sps:$4 sm:$0xff]   ;;  %v1388_v39 = vld [vmem:[#allocation7 + $0x64] ss:$8 sps:$4 sm:$0xff]  }
  0x68   :  { %v1356_v40 = vld [vmem:[#allocation5 + $0xc4] ss:$8 sps:$4 sm:$0xff]   ;;  %v1390_v41 = vld [vmem:[#allocation7 + $0x60] ss:$8 sps:$4 sm:$0xff]   ;;  %v1391_v43 = vld [vmem:[#allocation7 + $0x74] ss:$8 sps:$4 sm:$0xff]  }
  0x69   :  { %325 = vmatpush1.bf16.msra.mxu0 %v1331_v8  ;;  %v1358_v42 = vld [vmem:[#allocation5 + $0xc0] ss:$8 sps:$4 sm:$0xff]   ;;  %v1359_v44 = vld [vmem:[#allocation5 + $0xd4] ss:$8 sps:$4 sm:$0xff]   ;;  %v1393_v45 = vld [vmem:[#allocation7 + $0x70] ss:$8 sps:$4 sm:$0xff]  }
  0x6a   :  { %326 = vmatprep.subr.bf16.mxu0 %v1332_v9  ;;  %580 = vmatpush1.bf16.msra.mxu1 %v1378_v26  ;;  %v1361_v46 = vld [vmem:[#allocation5 + $0xd0] ss:$8 sps:$4 sm:$0xff]   ;;  %v1394_v47 = vld [vmem:[#allocation7 + $0x84] ss:$8 sps:$4 sm:$0xff]   ;;  %v1396_v49 = vld [vmem:[#allocation7 + $0x80] ss:$8 sps:$4 sm:$0xff]  }
  0x6b   :  { %581 = vmatprep.subr.bf16.mxu1 %v1379_v27  ;;  %v1362_v48 = vld [vmem:[#allocation5 + $0xe4] ss:$8 sps:$4 sm:$0xff]   ;;  %v1364_v50 = vld [vmem:[#allocation5 + $0xe0] ss:$8 sps:$4 sm:$0xff]   ;;  %v1397_v51 = vld [vmem:[#allocation7 + $0x94] ss:$8 sps:$4 sm:$0xff]  }
  0x6c   :  { %v1365_v52 = vld [vmem:[#allocation5 + $0xf4] ss:$8 sps:$4 sm:$0xff]   ;;  %v1399_v53 = vld [vmem:[#allocation7 + $0x90] ss:$8 sps:$4 sm:$0xff]   ;;  %v1400_v56 = vld [vmem:[#allocation7 + $0xa4] ss:$8 sps:$4 sm:$0xff]  }
  0x6d   :  { %327 = vmatpush1.bf16.msra.mxu0 %v1334_v10  ;;  %v1367_v54 = vld [vmem:[#allocation5 + $0xf0] ss:$8 sps:$4 sm:$0xff]   ;;  %v1402_v57 = vld [vmem:[#allocation7 + $0xa0] ss:$8 sps:$4 sm:$0xff]   ;;  %v1403_v58 = vld [vmem:[#allocation7 + $0xb4] ss:$8 sps:$4 sm:$0xff]  }
  0x6e   :  { %328 = vmatprep.subr.bf16.mxu0 %v1335_v11  ;;  %582 = vmatpush1.bf16.msra.mxu1 %v1381_v31  ;;  %v1405_v59 = vld [vmem:[#allocation7 + $0xb0] ss:$8 sps:$4 sm:$0xff]   ;;  %v1406_v60 = vld [vmem:[#allocation7 + $0xc4] ss:$8 sps:$4 sm:$0xff]   ;;  %v1408_v61 = vld [vmem:[#allocation7 + $0xc0] ss:$8 sps:$4 sm:$0xff]  }
  0x6f   :  { %583 = vmatprep.subr.bf16.mxu1 %v1382_v32  ;;  %v1409_v62 = vld [vmem:[#allocation7 + $0xd4] ss:$8 sps:$4 sm:$0xff]   ;;  %v1411_v63 = vld [vmem:[#allocation7 + $0xd0] ss:$8 sps:$4 sm:$0xff]   ;;  %v1412_v0 = vld [vmem:[#allocation7 + $0xe4] ss:$8 sps:$4 sm:$0xff]  }
  0x70   :  { %v1414_v1 = vld [vmem:[#allocation7 + $0xe0] ss:$8 sps:$4 sm:$0xff]   ;;  %v1415_v2 = vld [vmem:[#allocation7 + $0xf4] ss:$8 sps:$4 sm:$0xff]   ;;  %v1417_v3 = vld [vmem:[#allocation7 + $0xf0] ss:$8 sps:$4 sm:$0xff]  }
  0x71   :  { %329 = vmatpush1.bf16.msra.mxu0 %v1337_v12  ;;  %v1418_v4 = vld [vmem:[#allocation8] ss:$8 sps:$4 sm:$0xff]   ;;  %v1420_v5 = vld [vmem:[#allocation8 + $0x4] ss:$8 sps:$4 sm:$0xff]   ;;  %v1423_v6 = vld [vmem:[#allocation8 + $0x14] ss:$8 sps:$4 sm:$0xff]  }
  0x72   :  { %330 = vmatprep.subr.bf16.mxu0 %v1338_v13  ;;  %584 = vmatpush1.bf16.msra.mxu1 %v1384_v33  ;;  %v1421_v7 = vld [vmem:[#allocation8 + $0x10] ss:$8 sps:$4 sm:$0xff]   ;;  %v1426_v8 = vld [vmem:[#allocation8 + $0x24] ss:$8 sps:$4 sm:$0xff]   ;;  %v1424_v9 = vld [vmem:[#allocation8 + $0x20] ss:$8 sps:$4 sm:$0xff]  }
  0x73   :  { %585 = vmatprep.subr.bf16.mxu1 %v1385_v35  ;;  %v1429_v10 = vld [vmem:[#allocation8 + $0x34] ss:$8 sps:$4 sm:$0xff]   ;;  %v1427_v11 = vld [vmem:[#allocation8 + $0x30] ss:$8 sps:$4 sm:$0xff]   ;;  %v1432_v12 = vld [vmem:[#allocation8 + $0x44] ss:$8 sps:$4 sm:$0xff]  }
  0x74   :  { %v1430_v13 = vld [vmem:[#allocation8 + $0x40] ss:$8 sps:$4 sm:$0xff]   ;;  %v1433_v15 = vld [vmem:[#allocation8 + $0x50] ss:$8 sps:$4 sm:$0xff]   ;;  %v1438_v16 = vld [vmem:[#allocation8 + $0x64] ss:$8 sps:$4 sm:$0xff]  }
  0x75   :  { %331 = vmatpush1.bf16.msra.mxu0 %v1340_v14  ;;  %v1435_v14 = vld [vmem:[#allocation8 + $0x54] ss:$8 sps:$4 sm:$0xff]   ;;  %v1436_v17 = vld [vmem:[#allocation8 + $0x60] ss:$8 sps:$4 sm:$0xff]   ;;  %v1439_v19 = vld [vmem:[#allocation8 + $0x70] ss:$8 sps:$4 sm:$0xff]  }
  0x76   :  { %332 = vmatprep.subr.bf16.mxu0 %v1341_v20  ;;  %586 = vmatpush1.bf16.msra.mxu1 %v1387_v37  ;;  %v1441_v18 = vld [vmem:[#allocation8 + $0x74] ss:$8 sps:$4 sm:$0xff]   ;;  %v1444_v20 = vld [vmem:[#allocation8 + $0x84] ss:$8 sps:$4 sm:$0xff]   ;;  %v1445_v23 = vld [vmem:[#allocation8 + $0x90] ss:$8 sps:$4 sm:$0xff]  }
  0x77   :  { %587 = vmatprep.subr.bf16.mxu1 %v1388_v39  ;;  %v1447_v22 = vld [vmem:[#allocation8 + $0x94] ss:$8 sps:$4 sm:$0xff]  }
  0x78   :  { %v139_v27 = vld [vmem:[%s1830_s2] sm:$0x3] }
  0x79   :  { %333 = vmatpush1.bf16.msra.mxu0 %v1343_v21  ;;  %v1442_v21 = vld [vmem:[#allocation8 + $0x80] ss:$8 sps:$4 sm:$0xff]  }
  0x7a   :  { %334 = vmatprep.subr.bf16.mxu0 %v1344_v24  ;;  %588 = vmatpush1.bf16.msra.mxu1 %v1390_v41  ;;  %v141_v24 = vlaneseq }
  0x7b   :  { %589 = vmatprep.subr.bf16.mxu1 %v1391_v43 }
  0x7d   :  { %335 = vmatpush1.bf16.msra.mxu0 %v1346_v25  ;;  %v142_v25 = vshrl.u32 %v141_v24, 7 }
  0x7e   :  { %336 = vmatprep.subr.bf16.mxu0 %v1347_v28  ;;  %590 = vmatpush1.bf16.msra.mxu1 %v1393_v45 }
  0x7f   :  { %591 = vmatprep.subr.bf16.mxu1 %v1394_v47  ;;  %v1796_v26 = vsub.s32 0, %v142_v25  ;;  %v1801_v28 = vsub.s32 1, %v142_v25 }
  0x81   :  { %337 = vmatpush1.bf16.msra.mxu0 %v1349_v29  ;;  %v144_v29 = vrot.slane %v139_v27, %v1796_v26 }
  0x82   :  { %338 = vmatprep.subr.bf16.mxu0 %v1350_v30  ;;  %592 = vmatpush1.bf16.msra.mxu1 %v1396_v49  ;;  %v148_v30 = vrot.slane %v139_v27, %v1801_v28  ;;  %v1450_v49 = vld [vmem:[#allocation8 + $0xa4] ss:$8 sps:$4 sm:$0xff]  }
  0x83   :  { %593 = vmatprep.subr.bf16.mxu1 %v1397_v51  ;;  %v1453_v51 = vld [vmem:[#allocation8 + $0xb4] ss:$8 sps:$4 sm:$0xff]  }
  0x85   :  { %339 = vmatpush1.bf16.msra.mxu0 %v1352_v34 }
  0x86   :  { %340 = vmatprep.subr.bf16.mxu0 %v1353_v36  ;;  %594 = vmatpush1.bf16.msra.mxu1 %v1399_v53  ;;  %v1456_v53 = vld [vmem:[#allocation8 + $0xc4] ss:$8 sps:$4 sm:$0xff]  }
  0x87   :  { %595 = vmatprep.subr.bf16.mxu1 %v1400_v56  ;;  %v1457_v56 = vld [vmem:[#allocation8 + $0xd0] ss:$8 sps:$4 sm:$0xff]  }
  0x89   :  { %341 = vmatpush1.bf16.msra.mxu0 %v1355_v38 }
  0x8a   :  { %342 = vmatprep.subr.bf16.mxu0 %v1356_v40  ;;  %596 = vmatpush1.bf16.msra.mxu1 %v1402_v57  ;;  %v1462_v57 = vld [vmem:[#allocation8 + $0xe4] ss:$8 sps:$4 sm:$0xff]  }
  0x8b   :  { %597 = vmatprep.subr.bf16.mxu1 %v1403_v58  ;;  %v1460_v58 = vld [vmem:[#allocation8 + $0xe0] ss:$8 sps:$4 sm:$0xff]  }
  0x8d   :  { %343 = vmatpush1.bf16.msra.mxu0 %v1358_v42 }
  0x8e   :  { %344 = vmatprep.subr.bf16.mxu0 %v1359_v44  ;;  %598 = vmatpush1.bf16.msra.mxu1 %v1405_v59  ;;  %v1465_v59 = vld [vmem:[#allocation8 + $0xf4] ss:$8 sps:$4 sm:$0xff]  }
  0x8f   :  { %599 = vmatprep.subr.bf16.mxu1 %v1406_v60  ;;  %v1463_v60 = vld [vmem:[#allocation8 + $0xf0] ss:$8 sps:$4 sm:$0xff]  }
  0x91   :  { %345 = vmatpush1.bf16.msra.mxu0 %v1361_v46 }
  0x92   :  { %346 = vmatprep.subr.bf16.mxu0 %v1362_v48  ;;  %600 = vmatpush1.bf16.msra.mxu1 %v1408_v61  ;;  %v1466_v61 = vld [vmem:[#allocation10] ss:$8 sps:$4 sm:$0xff]  }
  0x93   :  { %601 = vmatprep.subr.bf16.mxu1 %v1409_v62  ;;  %v1468_v62 = vld [vmem:[#allocation10 + $0x4] ss:$8 sps:$4 sm:$0xff]  }
  0x95   :  { %347 = vmatpush1.bf16.msra.mxu0 %v1364_v50  ;;  %v1448_v50 = vld [vmem:[#allocation8 + $0xa0] ss:$8 sps:$4 sm:$0xff]  }
  0x96   :  { %348 = vmatprep.subr.bf16.mxu0 %v1365_v52  ;;  %602 = vmatpush1.bf16.msra.mxu1 %v1411_v63  ;;  %v1451_v52 = vld [vmem:[#allocation8 + $0xb0] ss:$8 sps:$4 sm:$0xff]   ;;  %v1471_v63 = vld [vmem:[#allocation10 + $0x14] ss:$8 sps:$4 sm:$0xff]  }
  0x97   :  { %603 = vmatprep.subr.bf16.mxu1 %v1412_v0  ;;  %v1469_v0 = vld [vmem:[#allocation10 + $0x10] ss:$8 sps:$4 sm:$0xff]  }
  0x99   :  { %349 = vmatpush1.bf16.msra.mxu0 %v1367_v54  ;;  %v1454_v54 = vld [vmem:[#allocation8 + $0xc0] ss:$8 sps:$4 sm:$0xff]  }
  0x9a   :  { %604 = vmatpush1.bf16.msra.mxu1 %v1414_v1  ;;  %832 = vmatprep.subr.bf16.mxu0 %v1420_v5  ;;  %v1474_v1 = vld [vmem:[#allocation10 + $0x24] ss:$8 sps:$4 sm:$0xff]  }
  0x9b   :  { %605 = vmatprep.subr.bf16.mxu1 %v1415_v2  ;;  %v1472_v2 = vld [vmem:[#allocation10 + $0x20] ss:$8 sps:$4 sm:$0xff]   ;;  %v1480_v5 = vld [vmem:[#allocation10 + $0x44] ss:$8 sps:$4 sm:$0xff]  }
  0x9c   :  { %351 = vmatmul.mubr.bf16.vlgmr.msra.gmra.mrb[0].mxu0 %v1182_v55  ;;  %v1459_v55 = vld [vmem:[#allocation8 + $0xd4] ss:$8 sps:$4 sm:$0xff]  }
  0x9d   :  { %833 = vmatpush1.bf16.msra.mxu0 %v1418_v4  ;;  %v1475_v4 = vld [vmem:[#allocation10 + $0x30] ss:$8 sps:$4 sm:$0xff]  }
  0x9e   :  { %606 = vmatpush1.bf16.msra.mxu1 %v1417_v3  ;;  %834 = vmatprep.subr.bf16.mxu0 %v1423_v6  ;;  %v1477_v3 = vld [vmem:[#allocation10 + $0x34] ss:$8 sps:$4 sm:$0xff]   ;;  %v1478_v6 = vld [vmem:[#allocation10 + $0x40] ss:$8 sps:$4 sm:$0xff]  }
  0x9f   :  { %1089 = vmatprep.subr.bf16.mxu1 %v1468_v62 }
  0xa1   :  { %835 = vmatpush1.bf16.msra.mxu0 %v1421_v7  ;;  %v1483_v7 = vld [vmem:[#allocation10 + $0x54] ss:$8 sps:$4 sm:$0xff]  }
  0xa2   :  { %836 = vmatprep.subr.bf16.mxu0 %v1426_v8  ;;  %v1481_v8 = vld [vmem:[#allocation10 + $0x50] ss:$8 sps:$4 sm:$0xff]  }
  0xa5   :  { %837 = vmatpush1.bf16.msra.mxu0 %v1424_v9  ;;  %v1486_v9 = vld [vmem:[#allocation10 + $0x64] ss:$8 sps:$4 sm:$0xff]  }
  0xa6   :  { %838 = vmatprep.subr.bf16.mxu0 %v1429_v10  ;;  %v1484_v10 = vld [vmem:[#allocation10 + $0x60] ss:$8 sps:$4 sm:$0xff]  }
  0xa9   :  { %839 = vmatpush1.bf16.msra.mxu0 %v1427_v11  ;;  %v1489_v11 = vld [vmem:[#allocation10 + $0x74] ss:$8 sps:$4 sm:$0xff]  }
  0xaa   :  { %840 = vmatprep.subr.bf16.mxu0 %v1432_v12  ;;  %v1487_v12 = vld [vmem:[#allocation10 + $0x70] ss:$8 sps:$4 sm:$0xff]  }
  0xad   :  { %841 = vmatpush1.bf16.msra.mxu0 %v1430_v13  ;;  %v1492_v13 = vld [vmem:[#allocation10 + $0x84] ss:$8 sps:$4 sm:$0xff]  }
  0xae   :  { %842 = vmatprep.subr.bf16.mxu0 %v1435_v14  ;;  %v1490_v14 = vld [vmem:[#allocation10 + $0x80] ss:$8 sps:$4 sm:$0xff]  }
  0xb1   :  { %843 = vmatpush1.bf16.msra.mxu0 %v1433_v15  ;;  %v1495_v15 = vld [vmem:[#allocation10 + $0x94] ss:$8 sps:$4 sm:$0xff]  }
  0xb2   :  { %844 = vmatprep.subr.bf16.mxu0 %v1438_v16  ;;  %v1493_v16 = vld [vmem:[#allocation10 + $0x90] ss:$8 sps:$4 sm:$0xff]  }
  0xb5   :  { %845 = vmatpush1.bf16.msra.mxu0 %v1436_v17  ;;  %v403_v17 = vld [vmem:[%s1832_s4] sm:$0x3] }
  0xb6   :  { %846 = vmatprep.subr.bf16.mxu0 %v1441_v18  ;;  %v408_v18 = vrot.slane %v403_v17, %v1796_v26 }
  0xb9   :  { %847 = vmatpush1.bf16.msra.mxu0 %v1439_v19  ;;  %v412_v19 = vrot.slane %v403_v17, %v1801_v28 }
  0xba   :  { %848 = vmatprep.subr.bf16.mxu0 %v1444_v20 }
  0xbd   :  { %849 = vmatpush1.bf16.msra.mxu0 %v1442_v21 }
  0xbe   :  { %850 = vmatprep.subr.bf16.mxu0 %v1447_v22 }
  0xc1   :  { %851 = vmatpush1.bf16.msra.mxu0 %v1445_v23 }
  0xc2   :  { %852 = vmatprep.subr.bf16.mxu0 %v1450_v49  ;;  %v1508_v49 = vld [vmem:[#allocation10 + $0xe0] ss:$8 sps:$4 sm:$0xff]  }
  0xc5   :  { %853 = vmatpush1.bf16.msra.mxu0 %v1448_v50  ;;  %v1513_v50 = vld [vmem:[#allocation10 + $0xf4] ss:$8 sps:$4 sm:$0xff]  }
  0xc6   :  { %854 = vmatprep.subr.bf16.mxu0 %v1453_v51  ;;  %v1511_v51 = vld [vmem:[#allocation10 + $0xf0] ss:$8 sps:$4 sm:$0xff]  }
  0xc9   :  { %855 = vmatpush1.bf16.msra.mxu0 %v1451_v52  ;;  %v660_v52 = vld [vmem:[%s1834_s6] sm:$0x3] }
  0xca   :  { %856 = vmatprep.subr.bf16.mxu0 %v1456_v53  ;;  %v665_v53 = vrot.slane %v660_v52, %v1796_v26 }
  0xcd   :  { %857 = vmatpush1.bf16.msra.mxu0 %v1454_v54  ;;  %v669_v54 = vrot.slane %v660_v52, %v1801_v28 }
  0xce   :  { %858 = vmatprep.subr.bf16.mxu0 %v1459_v55 }
  0xd1   :  { %859 = vmatpush1.bf16.msra.mxu0 %v1457_v56 }
  0xd2   :  { %860 = vmatprep.subr.bf16.mxu0 %v1462_v57 }
  0xd5   :  { %861 = vmatpush1.bf16.msra.mxu0 %v1460_v58 }
  0xd6   :  { %862 = vmatprep.subr.bf16.mxu0 %v1465_v59 }
  0xd9   :  { %863 = vmatpush1.bf16.msra.mxu0 %v1463_v60 }
 0x16f   :  { %v352_v31 = vpop.f32.mrb[0].mxu0 }
 0x170   :  { %v353_v32 = vadd.f32 %v352_v31, %v144_v29  ;;  %v354_v33 = vpop.f32.mrb[1].mxu0 }
 0x171   :  { %v355_v34 = vadd.f32 %v354_v33, %v148_v30  ;;  %v356_v35 = vpop.f32.mrb[2].mxu0 }
 0x172   :  { %v359_v36 = vmul.f32 0.5, %v353_v32  ;;  %v357_v37 = vpop.f32.mrb[3].mxu0 }
 0x173   :  { %v360_v38 = vmul.f32 0.5, %v355_v34 }
 0x174   :  { %1514 = vtanh.f32 %v359_v36 }
 0x175   :  { %1516 = vtanh.f32 %v360_v38 }
 0x17e   :  { %v1515_v39 = vpop.eup %1514 }
 0x17f   :  { %v1517_v40 = vpop.eup %1516  ;;  %v363_v41 = vmul.f32 0.5, %v1515_v39 }
 0x180   :  { %v364_v42 = vmul.f32 0.5, %v1517_v40  ;;  %v1498_v40 = vld [vmem:[#allocation10 + $0xa4] ss:$8 sps:$4 sm:$0xff]  }
 0x181   :  { %v365_v43 = vadd.f32 0.5, %v363_v41  ;;  %v1496_v41 = vld [vmem:[#allocation10 + $0xa0] ss:$8 sps:$4 sm:$0xff]  }
 0x182   :  { %v366_v44 = vadd.f32 0.5, %v364_v42  ;;  %v1501_v42 = vld [vmem:[#allocation10 + $0xb4] ss:$8 sps:$4 sm:$0xff]  }
 0x183   :  { %v367_v45 = vmul.f32 %v365_v43, %v353_v32  ;;  %v1499_v43 = vld [vmem:[#allocation10 + $0xb0] ss:$8 sps:$4 sm:$0xff]  }
 0x184   :  { %v368_v46 = vmul.f32 %v366_v44, %v355_v34  ;;  %v1504_v44 = vld [vmem:[#allocation10 + $0xc4] ss:$8 sps:$4 sm:$0xff]  }
 0x185   :  { %v369_v48 = vpack.c.bf16 %v367_v45, %v367_v45  ;;  %v1502_v45 = vld [vmem:[#allocation10 + $0xc0] ss:$8 sps:$4 sm:$0xff]  }
 0x186   :  { %v370_v47 = vpack.c.bf16 %v368_v46, %v368_v46  ;;  %v1507_v46 = vld [vmem:[#allocation10 + $0xd4] ss:$8 sps:$4 sm:$0xff]  }
 0x188   :  { %607 = vmatprep.mubr.bf16.mxu1 %v370_v47  ;;  %v1505_v47 = vld [vmem:[#allocation10 + $0xd0] ss:$8 sps:$4 sm:$0xff]  }
 0x189   :  { %608 = vmatmul.mubr.bf16.vlgmr.msra.gmra.mrb[0].mxu1 %v369_v48  ;;  %v1510_v48 = vld [vmem:[#allocation10 + $0xe4] ss:$8 sps:$4 sm:$0xff]  }
 0x18a   :  { %1090 = vmatpush1.bf16.msra.mxu1 %v1466_v61 }
 0x18b   :  { %1091 = vmatprep.subr.bf16.mxu1 %v1471_v63 }
 0x18e   :  { %1092 = vmatpush1.bf16.msra.mxu1 %v1469_v0 }
 0x18f   :  { %1093 = vmatprep.subr.bf16.mxu1 %v1474_v1 }
 0x192   :  { %1094 = vmatpush1.bf16.msra.mxu1 %v1472_v2 }
 0x193   :  { %1095 = vmatprep.subr.bf16.mxu1 %v1477_v3 }
 0x196   :  { %1096 = vmatpush1.bf16.msra.mxu1 %v1475_v4 }
 0x197   :  { %1097 = vmatprep.subr.bf16.mxu1 %v1480_v5 }
 0x19a   :  { %1098 = vmatpush1.bf16.msra.mxu1 %v1478_v6 }
 0x19b   :  { %1099 = vmatprep.subr.bf16.mxu1 %v1483_v7 }
 0x19e   :  { %1100 = vmatpush1.bf16.msra.mxu1 %v1481_v8 }
 0x19f   :  { %1101 = vmatprep.subr.bf16.mxu1 %v1486_v9  ;;  %v917_v9 = vld [vmem:[%s1836_s8] sm:$0x3] }
 0x1a2   :  { %1102 = vmatpush1.bf16.msra.mxu1 %v1484_v10  ;;  %v922_v10 = vrot.slane %v917_v9, %v1796_v26 }
 0x1a3   :  { %1103 = vmatprep.subr.bf16.mxu1 %v1489_v11  ;;  %v926_v11 = vrot.slane %v917_v9, %v1801_v28 }
 0x1a6   :  { %1104 = vmatpush1.bf16.msra.mxu1 %v1487_v12 }
 0x1a7   :  { %1105 = vmatprep.subr.bf16.mxu1 %v1492_v13 }
 0x1aa   :  { %1106 = vmatpush1.bf16.msra.mxu1 %v1490_v14 }
 0x1ab   :  { %1107 = vmatprep.subr.bf16.mxu1 %v1495_v15 }
 0x1ae   :  { %1108 = vmatpush1.bf16.msra.mxu1 %v1493_v16 }
 0x1af   :  { %1109 = vmatprep.subr.bf16.mxu1 %v1498_v40  ;;  %v1312_v40 = vld [vmem:[#allocation2] ss:$0 sm:$0xff] }
 0x1b2   :  { %1110 = vmatpush1.bf16.msra.mxu1 %v1496_v41 }
 0x1b3   :  { %1111 = vmatprep.subr.bf16.mxu1 %v1501_v42 }
 0x1b6   :  { %1112 = vmatpush1.bf16.msra.mxu1 %v1499_v43 }
 0x1b7   :  { %1113 = vmatprep.subr.bf16.mxu1 %v1504_v44 }
 0x1ba   :  { %1114 = vmatpush1.bf16.msra.mxu1 %v1502_v45 }
 0x1bb   :  { %1115 = vmatprep.subr.bf16.mxu1 %v1507_v46 }
 0x1be   :  { %1116 = vmatpush1.bf16.msra.mxu1 %v1505_v47 }
 0x1bf   :  { %1117 = vmatprep.subr.bf16.mxu1 %v1510_v48 }
 0x1c2   :  { %1118 = vmatpush1.bf16.msra.mxu1 %v1508_v49 }
 0x1c3   :  { %1119 = vmatprep.subr.bf16.mxu1 %v1513_v50 }
 0x1c6   :  { %1120 = vmatpush1.bf16.msra.mxu1 %v1511_v51 }
 0x25c   :  { %v609_v20 = vpop.f32.mrb[0].mxu1 }
 0x25d   :  { %v610_v21 = vadd.f32 %v609_v20, %v408_v18  ;;  %v611_v22 = vpop.f32.mrb[1].mxu1 }
 0x25e   :  { %v612_v23 = vadd.f32 %v611_v22, %v412_v19  ;;  %v613_v24 = vpop.f32.mrb[2].mxu1 }
 0x25f   :  { %v616_v25 = vmul.f32 0.5, %v610_v21  ;;  %v614_v27 = vpop.f32.mrb[3].mxu1 }
 0x260   :  { %v617_v29 = vmul.f32 0.5, %v612_v23  ;;  %v1144_v27 = vld [vmem:[%s1837_s9] sm:$0x3] }
 0x261   :  { %1518 = vtanh.f32 %v616_v25 }
 0x262   :  { %1520 = vtanh.f32 %v617_v29 }
 0x26b   :  { %v1519_v30 = vpop.eup %1518 }
 0x26c   :  { %v1521_v31 = vpop.eup %1520  ;;  %v620_v32 = vmul.f32 0.5, %v1519_v30 }
 0x26d   :  { %v621_v33 = vmul.f32 0.5, %v1521_v31 }
 0x26e   :  { %v622_v34 = vadd.f32 0.5, %v620_v32  ;;  %v1149_v32 = vrot.slane %v1144_v27, %v1796_v26 }
 0x26f   :  { %v623_v35 = vadd.f32 0.5, %v621_v33 }
 0x270   :  { %v624_v36 = vmul.f32 %v622_v34, %v610_v21  ;;  %v1153_v34 = vrot.slane %v1144_v27, %v1801_v28 }
 0x271   :  { %v625_v37 = vmul.f32 %v623_v35, %v612_v23 }
 0x272   :  { %v626_v39 = vpack.c.bf16 %v624_v36, %v624_v36 }
 0x273   :  { %v627_v38 = vpack.c.bf16 %v625_v37, %v625_v37 }
 0x275   :  { %864 = vmatprep.mubr.bf16.mxu0 %v627_v38 }
 0x276   :  { %865 = vmatmul.mubr.bf16.vlgmr.msra.gmra.mrb[4].mxu0 %v626_v39 }
 0x349   :  { %v866_v55 = vpop.f32.mrb[4].mxu0 }
 0x34a   :  { %v867_v56 = vadd.f32 %v866_v55, %v665_v53  ;;  %v868_v57 = vpop.f32.mrb[5].mxu0 }
 0x34b   :  { %v869_v58 = vadd.f32 %v868_v57, %v669_v54  ;;  %v870_v59 = vpop.f32.mrb[6].mxu0 }
 0x34c   :  { %v873_v60 = vmul.f32 0.5, %v867_v56  ;;  %v871_v61 = vpop.f32.mrb[7].mxu0 }
 0x34d   :  { %v874_v62 = vmul.f32 0.5, %v869_v58 }
 0x34e   :  { %1522 = vtanh.f32 %v873_v60 }
 0x34f   :  { %1524 = vtanh.f32 %v874_v62 }
 0x358   :  { %v1523_v63 = vpop.eup %1522 }
 0x359   :  { %v1525_v0 = vpop.eup %1524  ;;  %v877_v1 = vmul.f32 0.5, %v1523_v63 }
 0x35a   :  { %v878_v2 = vmul.f32 0.5, %v1525_v0 }
 0x35b   :  { %v879_v3 = vadd.f32 0.5, %v877_v1 }
 0x35c   :  { %v880_v4 = vadd.f32 0.5, %v878_v2 }
 0x35d   :  { %v881_v5 = vmul.f32 %v879_v3, %v867_v56 }
 0x35e   :  { %v882_v6 = vmul.f32 %v880_v4, %v869_v58 }
 0x35f   :  { %v883_v8 = vpack.c.bf16 %v881_v5, %v881_v5 }
 0x360   :  { %v884_v7 = vpack.c.bf16 %v882_v6, %v882_v6 }
 0x362   :  { %1121 = vmatprep.mubr.bf16.mxu1 %v884_v7 }
 0x363   :  { %1122 = vmatmul.mubr.bf16.vlgmr.msra.gmra.mrb[4].mxu1 %v883_v8 }
 0x436   :  { %v1123_v12 = vpop.f32.mrb[4].mxu1 }
 0x437   :  { %v1124_v13 = vadd.f32 %v1123_v12, %v922_v10  ;;  %v1125_v14 = vpop.f32.mrb[5].mxu1 }
 0x438   :  { %v1126_v15 = vadd.f32 %v1125_v14, %v926_v11  ;;  %v1127_v16 = vpop.f32.mrb[6].mxu1 }
 0x439   :  { %v1130_v17 = vmul.f32 0.5, %v1124_v13  ;;  %v1128_v18 = vpop.f32.mrb[7].mxu1 }
 0x43a   :  { %v1131_v19 = vmul.f32 0.5, %v1126_v15 }
 0x43b   :  { %1526 = vtanh.f32 %v1130_v17 }
 0x43c   :  { %1528 = vtanh.f32 %v1131_v19 }
 0x445   :  { %v1527_v20 = vpop.eup %1526 }
 0x446   :  { %v1529_v21 = vpop.eup %1528  ;;  %v1134_v22 = vmul.f32 0.5, %v1527_v20 }
 0x447   :  { %v1135_v23 = vmul.f32 0.5, %v1529_v21 }
 0x448   :  { %v1136_v24 = vadd.f32 0.5, %v1134_v22 }
 0x449   :  { %v1137_v25 = vadd.f32 0.5, %v1135_v23 }
 0x44a   :  { %v1138_v29 = vmul.f32 %v1136_v24, %v1124_v13 }
 0x44b   :  { %v1139_v30 = vmul.f32 %v1137_v25, %v1126_v15 }
 0x44c   :  { %v1140_v31 = vpack.c.bf16 %v1138_v29, %v1138_v29 }
 0x44d   :  { %v1141_v33 = vpack.c.bf16 %v1139_v30, %v1139_v30 }
 0x44e   :  { %v1142_v35 = vunpack.c.l.bf16 %v1140_v31 }
 0x44f   :  { %v1143_v36 = vunpack.c.l.bf16 %v1141_v33 }
 0x450   :  { %v1156_v37 = vmul.f32 %v1149_v32, %v1142_v35 }
 0x451   :  { %v1157_v38 = vmul.f32 %v1153_v34, %v1143_v36 }
 0x453   :  { %v1158_v39 = vadd.f32 %v1157_v38, %v1156_v37 }
 0x455   :  { %1159 = vadd.xlane.f32.xlu0 %v1158_v39 }
 0x4e2   :  { %v1160_v41 = vpop.xlane.xlu0 %1159 }
 0x4e3   :  { %v1168_v42 = vadd.f32 %v1312_v40, %v1160_v41 }
 0x4e5   :  { %v1169_v43 = vmul.f32 0.5, %v1168_v42 }
 0x4e7   :  { %1530 = vtanh.f32 %v1169_v43 }
 0x4f1   :  { %v1531_v44 = vpop.eup %1530 }
 0x4f2   :  { %v1171_v45 = vmul.f32 0.5, %v1531_v44 }
 0x4f4   :  { %v1172_v46 = vadd.f32 0.5, %v1171_v45 }
 0x4f6   :  { %1174 = vst.msk [vmem:[%s1839_s11] sm:$0xff] %vm1173_vm0, %v1172_v46 }
 0x4f7   :  { %1179 = vsyncpa [#allocation4], 1 }
 0x4f8   :  { %1180 = vsyncpa [#allocation6], 1 }
 0x4f9   :  { %1181 = vsyncpa [#allocation9], 1 }

</bundles_post_ra>
